<compile_context>
chip_gen: v7x
topology: tpu7x:2x2x1
jax: 0.10.0
libtpu: 0.0.40
codegen_flags: <defaults>
</compile_context>

<pallas_src>
import jax
import jax.numpy as jnp
from jax.experimental import pallas as pl
from jax.experimental.pallas import tpu as pltpu

LANE = 128  # TPU lane width; output feature dims are padded to this.
SUB = 8     # sublane width; total row count padded to a multiple of this.

_VMEM = pl.BlockSpec(memory_space=pltpu.MemorySpace.VMEM)


# ---------------------------------------------------------------------------
# Fused kernel factory (structure is static per crop-group configuration)
# ---------------------------------------------------------------------------
def _make_fused_kernel(n_groups):
    def kernel(*refs):
        xg_refs = refs[:n_groups]                       # (Ng, L_g*C) per group
        wg_refs = refs[n_groups:2 * n_groups]           # (L_g*C, LANE) per group
        be, w1, b1, w2, b2 = refs[2 * n_groups:2 * n_groups + 5]
        feats_ref, preds_ref = refs[-2:]

        # ---- encoder: one MXU matmul per resolution group ----------------
        # Average pool over L is folded into W_exp, so no transpose / reduce.
        bias = be[...]                                  # (1, LANE), hoisted once
        blocks = [
            jnp.dot(xg_refs[g][...], wg_refs[g][...],
                    preferred_element_type=jnp.float32) + bias
            for g in range(n_groups)
        ]
        feats = blocks[0] if n_groups == 1 else jnp.concatenate(blocks, axis=0)
        feats_ref[...] = feats                          # single dense store

        # ---- predictor head (2-layer MLP) on in-VMEM features ------------
        h = jnp.maximum(
            jnp.dot(feats, w1[...], preferred_element_type=jnp.float32) + b1[...],
            0.0,
        )
        preds_ref[...] = (
            jnp.dot(h, w2[...], preferred_element_type=jnp.float32) + b2[...]
        )

    return kernel


# ---------------------------------------------------------------------------
# MultiCropWrapper forward (glue in plain JAX / Python)
# ---------------------------------------------------------------------------
def _consecutive_group_counts(resolutions):
    """Python equivalent of unique_consecutive(..., return_counts=True)[1]."""
    counts = []
    prev = None
    for r in resolutions:
        if prev is not None and r == prev:
            counts[-1] += 1
        else:
            counts.append(1)
        prev = r
    return counts


def _pad2(a, rows, cols):
    return jnp.pad(a, ((0, rows - a.shape[0]), (0, cols - a.shape[1])))


def multi_crop_forward(x, params):
    """x: single (B, L, C) array or a list of them. Returns (preds, feats)."""
    if not isinstance(x, (list, tuple)):
        x = [x]
    resolutions = [int(inp.shape[1]) for inp in x]
    counts = _consecutive_group_counts(resolutions)

    C = int(x[0].shape[-1])
    D = int(params["w_enc"].shape[1])
    P = int(params["w2"].shape[1])
    n_total = sum(int(inp.shape[0]) for inp in x)
    n_pad = ((n_total + SUB - 1) // SUB) * SUB

    # Group consecutive same-resolution crops (the module's torch.cat) and
    # flatten each group (Ng, L, C) -> (Ng, L*C); contiguous reshape, free.
    x_groups, w_groups = [], []
    start = 0
    for cnt in counts:
        L = resolutions[start]
        grp = jnp.concatenate([x[start + i] for i in range(cnt)], axis=0)
        x_groups.append(grp.reshape(grp.shape[0], L * C))
        # Pool-folded, lane-padded encoder weight per group:
        #   W_exp[(l, c), d] = w_enc[c, d] / L  => x_flat @ W_exp == mean_L(x) @ w_enc
        w_groups.append(_pad2(jnp.tile(params["w_enc"] / L, (L, 1)), L * C, LANE))
        start += cnt

    # Pad the last group's rows so the concatenated output is sublane-dense
    # (padding rows produce bias-only features; sliced off below).
    if n_pad != n_total:
        x_groups[-1] = jnp.pad(x_groups[-1], ((0, n_pad - n_total), (0, 0)))

    # Lane-pad head weights/biases once (zero padding keeps extra cols exact 0).
    b_enc = _pad2(params["b_enc"], 1, LANE)
    w1 = _pad2(params["w1"], LANE, LANE)
    b1 = _pad2(params["b1"], 1, LANE)
    w2 = _pad2(params["w2"], LANE, LANE)
    b2 = _pad2(params["b2"], 1, LANE)

    kernel = _make_fused_kernel(len(counts))
    n_inputs = 2 * len(counts) + 5

    feats_pad, preds_pad = pl.pallas_call(
        kernel,
        out_shape=(
            jax.ShapeDtypeStruct((n_pad, LANE), jnp.float32),
            jax.ShapeDtypeStruct((n_pad, LANE), jnp.float32),
        ),
        in_specs=[_VMEM] * n_inputs,
        out_specs=(_VMEM, _VMEM),
    )(*x_groups, *w_groups, b_enc, w1, b1, w2, b2)

    return preds_pad[:n_total, :P], feats_pad[:n_total, :D]


# ---------------------------------------------------------------------------
# Main
# ---------------------------------------------------------------------------
if __name__ == "__main__":
    key = jax.random.PRNGKey(0)
    B, C = 2, 8          # batch per crop, channels
    L_global, L_local = 16, 8
    D, P = 32, 16        # encoder feature dim, predictor output dim

    k = jax.random.split(key, 9)
    # Two global crops (L=16) followed by two local crops (L=8).
    x_list = [
        jax.random.normal(k[0], (B, L_global, C), jnp.float32),
        jax.random.normal(k[1], (B, L_global, C), jnp.float32),
        jax.random.normal(k[2], (B, L_local, C), jnp.float32),
        jax.random.normal(k[3], (B, L_local, C), jnp.float32),
    ]

    params = {
        "w_enc": jax.random.normal(k[4], (C, D), jnp.float32) * 0.1,
        "b_enc": jnp.zeros((1, D), jnp.float32),
        "w1": jax.random.normal(k[5], (D, D), jnp.float32) * 0.1,
        "b1": jnp.zeros((1, D), jnp.float32),
        "w2": jax.random.normal(k[6], (D, P), jnp.float32) * 0.1,
        "b2": jnp.zeros((1, P), jnp.float32),
    }

    preds, feats = multi_crop_forward(x_list, params)
    jax.block_until_ready((preds, feats))

    # Reference: exactly the original module semantics in plain JAX.
    def ref_forward(x_list, p):
        feats_parts = []
        for grp in (x_list[0:2], x_list[2:4]):
            inp = jnp.transpose(jnp.concatenate(grp, axis=0), (0, 2, 1))  # NCL
            pooled = jnp.mean(inp, axis=-1)
            feats_parts.append(pooled @ p["w_enc"] + p["b_enc"])
        f = jnp.concatenate(feats_parts, axis=0)
        h = jnp.maximum(f @ p["w1"] + p["b1"], 0.0)
        return h @ p["w2"] + p["b2"], f

    ref_preds, ref_feats = ref_forward(x_list, params)
    assert preds.shape == (4 * B, P) and feats.shape == (4 * B, D)
    assert jnp.allclose(preds, ref_preds, atol=1e-5, rtol=1e-5)
    assert jnp.allclose(feats, ref_feats, atol=1e-5, rtol=1e-5)

    print("KERNEL_OK")
</pallas_src>

<mosaic_0001>
module attributes {stable_mosaic.version = 11 : i64} {
  func.func @kernel(%arg0: memref<4x128xf32, #tpu.memory_space<vmem>>, %arg1: memref<4x64xf32, #tpu.memory_space<vmem>>, %arg2: memref<128x128xf32, #tpu.memory_space<vmem>>, %arg3: memref<64x128xf32, #tpu.memory_space<vmem>>, %arg4: memref<1x128xf32, #tpu.memory_space<vmem>>, %arg5: memref<128x128xf32, #tpu.memory_space<vmem>>, %arg6: memref<1x128xf32, #tpu.memory_space<vmem>>, %arg7: memref<128x128xf32, #tpu.memory_space<vmem>>, %arg8: memref<1x128xf32, #tpu.memory_space<vmem>>, %arg9: memref<8x128xf32, #tpu.memory_space<vmem>>, %arg10: memref<8x128xf32, #tpu.memory_space<vmem>>) attributes {dimension_semantics = [], scalar_prefetch = 0 : i64, scratch_operands = 0 : i64, tpu.core_type = #tpu.core_type<tc>} {
    %c0 = arith.constant 0 : index
    %c0_0 = arith.constant 0 : index
    %0 = vector.load %arg4[%c0, %c0_0] : memref<1x128xf32, #tpu.memory_space<vmem>>, vector<1x128xf32>
    %c0_1 = arith.constant 0 : index
    %c0_2 = arith.constant 0 : index
    %1 = vector.load %arg0[%c0_1, %c0_2] : memref<4x128xf32, #tpu.memory_space<vmem>>, vector<4x128xf32>
    %c0_3 = arith.constant 0 : index
    %c0_4 = arith.constant 0 : index
    %2 = vector.load %arg2[%c0_3, %c0_4] : memref<128x128xf32, #tpu.memory_space<vmem>>, vector<128x128xf32>
    %cst = arith.constant dense<0.000000e+00> : vector<4x128xf32>
    %3 = tpu.matmul %1, %2, %cst {dimension_numbers = #tpu.dot_dimension_numbers<[1], [0], [0], [1], [0, 0, 1, 1], [], []>} : vector<4x128xf32>, vector<128x128xf32>, vector<4x128xf32> -> vector<4x128xf32>
    %4 = vector.broadcast %0 : vector<1x128xf32> to vector<4x128xf32>
    %5 = arith.addf %3, %4 : vector<4x128xf32>
    %c0_5 = arith.constant 0 : index
    %c0_6 = arith.constant 0 : index
    %6 = vector.load %arg1[%c0_5, %c0_6] : memref<4x64xf32, #tpu.memory_space<vmem>>, vector<4x64xf32>
    %c0_7 = arith.constant 0 : index
    %c0_8 = arith.constant 0 : index
    %7 = vector.load %arg3[%c0_7, %c0_8] : memref<64x128xf32, #tpu.memory_space<vmem>>, vector<64x128xf32>
    %cst_9 = arith.constant dense<0.000000e+00> : vector<4x128xf32>
    %8 = tpu.matmul %6, %7, %cst_9 {dimension_numbers = #tpu.dot_dimension_numbers<[1], [0], [0], [1], [0, 0, 1, 1], [], []>} : vector<4x64xf32>, vector<64x128xf32>, vector<4x128xf32> -> vector<4x128xf32>
    %9 = vector.broadcast %0 : vector<1x128xf32> to vector<4x128xf32>
    %10 = arith.addf %8, %9 : vector<4x128xf32>
    %11 = tpu.concatenate %5, %10 in 0 : vector<4x128xf32>, vector<4x128xf32> -> vector<8x128xf32>
    %c0_10 = arith.constant 0 : index
    %c0_11 = arith.constant 0 : index
    %12 = vector.load %arg9[%c0_10, %c0_11] : memref<8x128xf32, #tpu.memory_space<vmem>>, vector<8x128xf32>
    tpu.vector_store %arg9[%c0_10, %c0_11], %11 {strides = array<i32>} : memref<8x128xf32, #tpu.memory_space<vmem>>, vector<8x128xf32>,
    %c0_12 = arith.constant 0 : index
    %c0_13 = arith.constant 0 : index
    %13 = vector.load %arg5[%c0_12, %c0_13] : memref<128x128xf32, #tpu.memory_space<vmem>>, vector<128x128xf32>
    %cst_14 = arith.constant dense<0.000000e+00> : vector<8x128xf32>
    %14 = tpu.matmul %11, %13, %cst_14 {dimension_numbers = #tpu.dot_dimension_numbers<[1], [0], [0], [1], [0, 0, 1, 1], [], []>} : vector<8x128xf32>, vector<128x128xf32>, vector<8x128xf32> -> vector<8x128xf32>
    %c0_15 = arith.constant 0 : index
    %c0_16 = arith.constant 0 : index
    %15 = vector.load %arg6[%c0_15, %c0_16] : memref<1x128xf32, #tpu.memory_space<vmem>>, vector<1x128xf32>
    %16 = vector.broadcast %15 : vector<1x128xf32> to vector<8x128xf32>
    %17 = arith.addf %14, %16 : vector<8x128xf32>
    %cst_17 = arith.constant 0.000000e+00 : f32
    %18 = vector.broadcast %cst_17 : f32 to vector<8x128xf32>
    %19 = arith.maximumf %17, %18 : vector<8x128xf32>
    %c0_18 = arith.constant 0 : index
    %c0_19 = arith.constant 0 : index
    %20 = vector.load %arg7[%c0_18, %c0_19] : memref<128x128xf32, #tpu.memory_space<vmem>>, vector<128x128xf32>
    %cst_20 = arith.constant dense<0.000000e+00> : vector<8x128xf32>
    %21 = tpu.matmul %19, %20, %cst_20 {dimension_numbers = #tpu.dot_dimension_numbers<[1], [0], [0], [1], [0, 0, 1, 1], [], []>} : vector<8x128xf32>, vector<128x128xf32>, vector<8x128xf32> -> vector<8x128xf32>
    %c0_21 = arith.constant 0 : index
    %c0_22 = arith.constant 0 : index
    %22 = vector.load %arg8[%c0_21, %c0_22] : memref<1x128xf32, #tpu.memory_space<vmem>>, vector<1x128xf32>
    %23 = vector.broadcast %22 : vector<1x128xf32> to vector<8x128xf32>
    %24 = arith.addf %21, %23 : vector<8x128xf32>
    %c0_23 = arith.constant 0 : index
    %c0_24 = arith.constant 0 : index
    %25 = vector.load %arg10[%c0_23, %c0_24] : memref<8x128xf32, #tpu.memory_space<vmem>>, vector<8x128xf32>
    tpu.vector_store %arg10[%c0_23, %c0_24], %24 {strides = array<i32>} : memref<8x128xf32, #tpu.memory_space<vmem>>, vector<8x128xf32>,
    return
  }
}

</mosaic_0001>

<bundles_post_ra>
// kernel: tpu_custom_call.1
= control target key start
LH: loop header
LB: loop body
LE: loop exit
PB: predicated region body
PF: predicated region fallthrough
CT: control target
= control target key end

     0   :  { %16 = vsyncpa [#allocation3], 0  ;;  %s1211_s0 = inlined_call_operand.hbm [shape: f32[4,128], index: 0, kind: input, shape index: {}]   ;;  %s1212_s1 = inlined_call_operand.hbm [shape: f32[4,64], index: 1, kind: input, shape index: {}]   ;;  %s1213_s2 = inlined_call_operand.hbm [shape: f32[128,128], index: 2, kind: input, shape index: {}]   ;;  %s1214_s3 = inlined_call_operand.hbm [shape: f32[64,128], index: 3, kind: input, shape index: {}]   ;;  %s1215_s4 = inlined_call_operand.vmem [shape: f32[1,128], index: 4, kind: input, shape index: {}]   ;;  %s1216_s5 = inlined_call_operand.hbm [shape: f32[128,128], index: 5, kind: input, shape index: {}]   ;;  %s1217_s6 = inlined_call_operand.vmem [shape: f32[1,128], index: 6, kind: input, shape index: {}]   ;;  %s1218_s7 = inlined_call_operand.hbm [shape: f32[128,128], index: 7, kind: input, shape index: {}]   ;;  %s1219_s8 = inlined_call_operand.vmem [shape: f32[1,128], index: 8, kind: input, shape index: {}]   ;;  %s1220_s9 = inlined_call_operand.hbm [shape: f32[8,128], index: 9, kind: output, shape index: {0}]   ;;  %s1221_s10 = inlined_call_operand.hbm [shape: f32[8,128], index: 10, kind: output, shape index: {1}]  }
   0x1   :  { %17 = vsyncpa [#allocation6], 0 }
   0x2   :  { %18 = vsyncpa [#allocation9], 0 }
   0x3   :  { %19 = vsyncpa [#allocation12], 0 }
   0x4   :  { %20 = vsyncpa [#allocation4], 0 }
   0x5   :  { %21 = vsyncpa [#allocation15], 0  ;;  %s990_s13 = smov [#allocation5]   ;;  %s802_s17 = scalar_lea.hbm %s1212_s1, 64 }
   0x6   :  { %s38_s14 = sshll.u32 %s990_s13, 4  ;;  %p803_p0 = scmp.ne.s32.totalorder %s1212_s1, %s802_s17  ;;  %s39_s14 = int_to_ptr.vmem [resolvable:$true] %s38_s14 }
   0x7   :  { %p806_p1 = scmp.lt.u32.totalorder %s802_s17, %s1212_s1 }
   0x9   :  { %p808_p2 = pnand %p806_p1, %p803_p0 }
   0xb   :  { %811 = shalt.err (!%p808_p2)
}
   0xc   :  { %s812_s22 = scalar_lea.vmem %s39_s14, 64  ;;  %p817_p4 = scmp.lt.s32.totalorder %s39_s14, %s39_s14 }
   0xd   :  { %p813_p3 = scmp.ne.s32.totalorder %s39_s14, %s812_s22  ;;  %p818_p5 = scmp.lt.s32.totalorder %s812_s22, %s812_s22 }
   0xf   :  { %p819_p6 = por %p818_p5, %p817_p4 }
  0x11   :  { %p820_p7 = pnand %p819_p6, %p813_p3 }
  0x13   :  { %823 = shalt.err (!%p820_p7)
}
  0x14   :  { %41 = dma.hbm_to_vmem [thread:$0]  %s1212_s1, 64, %s39_s14, [#allocation6]  }
  0x15   :  { %s991_s25 = smov [#allocation8]   ;;  %s992_s27 = smov [#allocation2]  }
  0x16   :  { %s59_s26 = sshll.u32 %s991_s25, 4  ;;  %s28_s28 = sshll.u32 %s992_s27, 4  ;;  %s60_s26 = int_to_ptr.vmem [resolvable:$true] %s59_s26  ;;  %s29_s28 = int_to_ptr.vmem [resolvable:$true] %s28_s28 }
  0x17   :  { %s824_s11 = scalar_lea.hbm %s1214_s3, 1024 }
  0x18   :  { %p825_p8 = scmp.ne.s32.totalorder %s1214_s3, %s824_s11  ;;  %p828_p9 = scmp.lt.u32.totalorder %s824_s11, %s1214_s3 }
  0x1a   :  { %p830_p10 = pnand %p828_p9, %p825_p8 }
  0x1c   :  { %833 = shalt.err (!%p830_p10)
}
  0x1d   :  { %s834_s1 = scalar_lea.vmem %s60_s26, 1024  ;;  %p839_p12 = scmp.lt.s32.totalorder %s60_s26, %s60_s26 }
  0x1e   :  { %p835_p11 = scmp.ne.s32.totalorder %s60_s26, %s834_s1  ;;  %p840_p13 = scmp.lt.s32.totalorder %s834_s1, %s834_s1 }
  0x20   :  { %p841_p0 = por %p840_p13, %p839_p12 }
  0x22   :  { %p842_p1 = pnand %p841_p0, %p835_p11 }
  0x24   :  { %845 = shalt.err (!%p842_p1)
}
  0x25   :  { %s993_s14 = smov 128   ;;  %s994_s17 = smov 8  }
  0x26   :  { %65 = dma.hbm_to_vmem [thread:$0]  %s1214_s3, 1024, %s60_s26, [#allocation9], %s993_s14, %s993_s14, %s994_s17  }
  0x27   :  { %s846_s22 = scalar_lea.hbm %s1211_s0, 64 }
  0x28   :  { %p847_p2 = scmp.ne.s32.totalorder %s1211_s0, %s846_s22  ;;  %p850_p3 = scmp.lt.u32.totalorder %s846_s22, %s1211_s0 }
  0x2a   :  { %p852_p4 = pnand %p850_p3, %p847_p2 }
  0x2c   :  { %855 = shalt.err (!%p852_p4)
}
  0x2d   :  { %s856_s29 = scalar_lea.vmem %s29_s28, 64  ;;  %p861_p6 = scmp.lt.s32.totalorder %s29_s28, %s29_s28 }
  0x2e   :  { %p857_p5 = scmp.ne.s32.totalorder %s29_s28, %s856_s29  ;;  %p862_p7 = scmp.lt.s32.totalorder %s856_s29, %s856_s29 }
  0x30   :  { %p863_p8 = por %p862_p7, %p861_p6 }
  0x32   :  { %p864_p9 = pnand %p863_p8, %p857_p5 }
  0x34   :  { %867 = shalt.err (!%p864_p9)
}
  0x35   :  { %31 = dma.hbm_to_vmem [thread:$0]  %s1211_s0, 64, %s29_s28, [#allocation3]  }
  0x36   :  { %s995_s30 = smov [#allocation7]   ;;  %s996_s12 = smov [#allocation10]  }
  0x37   :  { %s47_s11 = sshll.u32 %s995_s30, 4  ;;  %s73_s13 = sshll.u32 %s996_s12, 4  ;;  %s48_s11 = int_to_ptr.vmem [resolvable:$true] %s47_s11  ;;  %s74_s13 = int_to_ptr.vmem [resolvable:$true] %s73_s13 }
  0x38   :  { %s868_s1 = scalar_lea.hbm %s1213_s2, 2048 }
  0x39   :  { %p869_p10 = scmp.ne.s32.totalorder %s1213_s2, %s868_s1  ;;  %p872_p11 = scmp.lt.u32.totalorder %s868_s1, %s1213_s2 }
  0x3b   :  { %p874_p12 = pnand %p872_p11, %p869_p10 }
  0x3d   :  { %877 = shalt.err (!%p874_p12)
}
  0x3e   :  { %s878_s0 = scalar_lea.vmem %s48_s11, 2048  ;;  %p883_p0 = scmp.lt.s32.totalorder %s48_s11, %s48_s11 }
  0x3f   :  { %p879_p13 = scmp.ne.s32.totalorder %s48_s11, %s878_s0  ;;  %p884_p1 = scmp.lt.s32.totalorder %s878_s0, %s878_s0 }
  0x41   :  { %p885_p2 = por %p884_p1, %p883_p0 }
  0x43   :  { %p886_p3 = pnand %p885_p2, %p879_p13 }
  0x45   :  { %889 = shalt.err (!%p886_p3)
}
  0x46   :  { %53 = dma.hbm_to_vmem [thread:$0]  %s1213_s2, 2048, %s48_s11, [#allocation6], %s993_s14, %s993_s14, %s994_s17  }
  0x47   :  { %s890_s25 = scalar_lea.hbm %s1216_s5, 2048 }
  0x48   :  { %p891_p4 = scmp.ne.s32.totalorder %s1216_s5, %s890_s25  ;;  %p894_p5 = scmp.lt.u32.totalorder %s890_s25, %s1216_s5 }
  0x4a   :  { %p896_p6 = pnand %p894_p5, %p891_p4 }
  0x4c   :  { %899 = shalt.err (!%p896_p6)
}
  0x4d   :  { %s900_s30 = scalar_lea.vmem %s74_s13, 2048  ;;  %p905_p8 = scmp.lt.s32.totalorder %s74_s13, %s74_s13 }
  0x4e   :  { %p901_p7 = scmp.ne.s32.totalorder %s74_s13, %s900_s30  ;;  %p906_p9 = scmp.lt.s32.totalorder %s900_s30, %s900_s30 }
  0x50   :  { %p907_p10 = por %p906_p9, %p905_p8 }
  0x52   :  { %p908_p11 = pnand %p907_p10, %p901_p7 }
  0x54   :  { %911 = shalt.err (!%p908_p11)
}
  0x55   :  { %79 = dma.hbm_to_vmem [thread:$0]  %s1216_s5, 2048, %s74_s13, [#allocation9], %s993_s14, %s993_s14, %s994_s17  }
  0x56   :  { %s997_s12 = smov [#allocation11]   ;;  %s912_s18 = scalar_lea.hbm %s1218_s7, 2048 }
  0x57   :  { %s87_s15 = sshll.u32 %s997_s12, 4  ;;  %p913_p12 = scmp.ne.s32.totalorder %s1218_s7, %s912_s18  ;;  %s88_s15 = int_to_ptr.vmem [resolvable:$true] %s87_s15 }
  0x58   :  { %p916_p13 = scmp.lt.u32.totalorder %s912_s18, %s1218_s7 }
  0x5a   :  { %p918_p0 = pnand %p916_p13, %p913_p12 }
  0x5c   :  { %921 = shalt.err (!%p918_p0)
}
  0x5d   :  { %s922_s28 = scalar_lea.vmem %s88_s15, 2048  ;;  %p927_p2 = scmp.lt.s32.totalorder %s88_s15, %s88_s15 }
  0x5e   :  { %p923_p1 = scmp.ne.s32.totalorder %s88_s15, %s922_s28  ;;  %p928_p3 = scmp.lt.s32.totalorder %s922_s28, %s922_s28 }
  0x60   :  { %p929_p4 = por %p928_p3, %p927_p2 }
  0x62   :  { %p930_p5 = pnand %p929_p4, %p923_p1 }
  0x64   :  { %933 = shalt.err (!%p930_p5)
}
  0x65   :  { %93 = dma.hbm_to_vmem [thread:$0]  %s1218_s7, 2048, %s88_s15, [#allocation12], %s993_s14, %s993_s14, %s994_s17  }
  0x66   :  { %978 = dma.done.wait [#allocation3], 64  }
  0x67   :  { %979 = vsyncadd [#allocation3], 4294967232 }
  0x68   :  { %980 = dma.done.wait [#allocation6], 2112  }
  0x69   :  { %981 = vsyncadd [#allocation6], 4294965184 }
  0x6a   :  { %982 = dma.done.wait [#allocation9], 3072  }
  0x6b   :  { %983 = vsyncadd [#allocation9], 4294964224 }
  0x6c   :  { %984 = dma.done.wait [#allocation12], 2048  }
  0x6d   :  { %985 = vsyncadd [#allocation12], 4294965248  ;;  %v998_v0 = vmov 0.0|0.0   ;;  %vm999_vm0 = vmmov 0   ;;  %v1000_v1 = vmov 0.0   ;;  %v116_v2 = vld [vmem:[#allocation7] sm:$0xff] }
  0x6e   :  { %705 = vmatprep.subr.bf16.mxu0 %v998_v0  ;;  %729 = vmatprep.subr.bf16.mxu1 %v998_v0  ;;  %v117_v3 = vld [vmem:[#allocation7 + $0x8] sm:$0xff]  ;;  %v118_v4 = vld [vmem:[#allocation7 + $0x10] sm:$0xff]  ;;  %v119_v6 = vld [vmem:[#allocation7 + $0x18] sm:$0xff]  ;;  %vm217_vm1 = vcmask 523264   ;;  %vm294_vm2 = vcmask 1043456  }
  0x6f   :  { %632 = vmatprep.mubr.msk.f32.mxu1 %vm999_vm0, %v1000_v1  ;;  %613 = vmatprep.mubr.msk.f32.mxu0 %vm999_vm0, %v1000_v1  ;;  %v706_v5 = vpack.c.bf16 %v117_v3, %v116_v2  ;;  %v209_v7 = vld [vmem:[#allocation8] sm:$0xff]  ;;  %v709_v8 = vpack.c.bf16 %v119_v6, %v118_v4  ;;  %v210_v10 = vld [vmem:[#allocation8 + $0x8] sm:$0xff]  ;;  %v211_v13 = vld [vmem:[#allocation8 + $0x10] sm:$0xff] }
  0x70   :  { %v120_v9 = vld [vmem:[#allocation7 + $0x20] sm:$0xff]  ;;  %v121_v11 = vld [vmem:[#allocation7 + $0x28] sm:$0xff]  ;;  %v730_v12 = vpack.c.bf16 %v210_v10, %v209_v7  ;;  %v212_v14 = vld [vmem:[#allocation8 + $0x18] sm:$0xff] }
  0x71   :  { %707 = vmatpush3.bf16.msra.mxu0 %v706_v5  ;;  %v733_v15 = vpack.c.bf16 %v212_v14, %v211_v13  ;;  %v712_v16 = vpack.c.bf16 %v121_v11, %v120_v9  ;;  %v213_v17 = vld [vmem:[#allocation8 + $0x20] sm:$0xff]  ;;  %v214_v18 = vld [vmem:[#allocation8 + $0x28] sm:$0xff]  ;;  %v122_v19 = vld [vmem:[#allocation7 + $0x30] sm:$0xff] }
  0x72   :  { %708 = vmatprep.subr.bf16.mxu0 %v998_v0  ;;  %731 = vmatpush3.bf16.msra.mxu1 %v730_v12  ;;  %v123_v20 = vld [vmem:[#allocation7 + $0x38] sm:$0xff]  ;;  %v736_v21 = vpack.c.bf16 %v214_v18, %v213_v17  ;;  %v215_v23 = vld [vmem:[#allocation8 + $0x30] sm:$0xff]  ;;  %v124_v25 = vld [vmem:[#allocation7 + $0x40] sm:$0xff] }
  0x73   :  { %732 = vmatprep.subr.bf16.mxu1 %v998_v0  ;;  %v715_v22 = vpack.c.bf16 %v123_v20, %v122_v19  ;;  %v216_v24 = vld [vmem:[#allocation8 + $0x38] sm:$0xff]  ;;  %v125_v26 = vld [vmem:[#allocation7 + $0x48] sm:$0xff]  ;;  %v297_v29 = vld [vmem:[#allocation10] sm:$0xff] }
  0x74   :  { %v739_v27 = vpack.c.bf16 %v216_v24, %v215_v23  ;;  %v718_v28 = vpack.c.bf16 %v125_v26, %v124_v25  ;;  %v298_v30 = vld [vmem:[#allocation10 + $0x8] sm:$0xff]  ;;  %v126_v31 = vld [vmem:[#allocation7 + $0x50] sm:$0xff]  ;;  %v127_v32 = vld [vmem:[#allocation7 + $0x58] sm:$0xff] }
  0x75   :  { %710 = vmatpush3.bf16.msra.mxu0 %v709_v8  ;;  %v208_v33 = vld [vmem:[#allocation5] sm:$0xf]  ;;  %v742_v34 = vpack.c.bf16 %v298_v30, %v297_v29  ;;  %v721_v35 = vpack.c.bf16 %v127_v32, %v126_v31  ;;  %v299_v36 = vld [vmem:[#allocation10 + $0x10] sm:$0xff]  ;;  %v128_v38 = vld [vmem:[#allocation7 + $0x60] sm:$0xff] }
  0x76   :  { %711 = vmatprep.subr.bf16.mxu0 %v998_v0  ;;  %734 = vmatpush3.bf16.msra.mxu1 %v733_v15  ;;  %v300_v37 = vld [vmem:[#allocation10 + $0x18] sm:$0xff]  ;;  %v129_v39 = vld [vmem:[#allocation7 + $0x68] sm:$0xff]  ;;  %v301_v42 = vld [vmem:[#allocation10 + $0x20] sm:$0xff] }
  0x77   :  { %735 = vmatprep.subr.bf16.mxu1 %v998_v0  ;;  %v745_v40 = vpack.c.bf16 %v300_v37, %v299_v36  ;;  %v724_v41 = vpack.c.bf16 %v129_v39, %v128_v38  ;;  %v302_v43 = vld [vmem:[#allocation10 + $0x28] sm:$0xff]  ;;  %v130_v44 = vld [vmem:[#allocation7 + $0x70] sm:$0xff]  ;;  %v131_v45 = vld [vmem:[#allocation7 + $0x78] sm:$0xff] }
  0x78   :  { %v748_v46 = vpack.c.bf16 %v302_v43, %v301_v42  ;;  %v727_v47 = vpack.c.bf16 %v131_v45, %v130_v44  ;;  %v303_v48 = vld [vmem:[#allocation10 + $0x30] sm:$0xff]  ;;  %v304_v49 = vld [vmem:[#allocation10 + $0x38] sm:$0xff]  ;;  %v305_v52 = vld [vmem:[#allocation10 + $0x40] sm:$0xff] }
  0x79   :  { %713 = vmatpush3.bf16.msra.mxu0 %v712_v16  ;;  %v751_v50 = vpack.c.bf16 %v304_v49, %v303_v48  ;;  %v115_v51 = vld [vmem:[#allocation2] sm:$0xf]  ;;  %v306_v53 = vld [vmem:[#allocation10 + $0x48] sm:$0xff]  ;;  %v307_v55 = vld [vmem:[#allocation10 + $0x50] sm:$0xff] }
  0x7a   :  { %714 = vmatprep.subr.bf16.mxu0 %v998_v0  ;;  %737 = vmatpush3.bf16.msra.mxu1 %v736_v21  ;;  %v754_v54 = vpack.c.bf16 %v306_v53, %v305_v52  ;;  %v308_v56 = vld [vmem:[#allocation10 + $0x58] sm:$0xff]  ;;  %v309_v58 = vld [vmem:[#allocation10 + $0x60] sm:$0xff]  ;;  %v310_v59 = vld [vmem:[#allocation10 + $0x68] sm:$0xff] }
  0x7b   :  { %738 = vmatprep.subr.bf16.mxu1 %v998_v0  ;;  %v757_v57 = vpack.c.bf16 %v308_v56, %v307_v55  ;;  %v760_v60 = vpack.c.bf16 %v310_v59, %v309_v58  ;;  %v311_v61 = vld [vmem:[#allocation10 + $0x70] sm:$0xff]  ;;  %v312_v62 = vld [vmem:[#allocation10 + $0x78] sm:$0xff]  ;;  %v391_v2 = vld [vmem:[#allocation11] sm:$0xff] }
  0x7c   :  { %v763_v63 = vpack.c.bf16 %v312_v62, %v311_v61  ;;  %v392_v3 = vld [vmem:[#allocation11 + $0x8] sm:$0xff]  ;;  %v394_v5 = vld [vmem:[#allocation11 + $0x18] sm:$0xff]  ;;  %v395_v7 = vld [vmem:[#allocation11 + $0x20] sm:$0xff] }
  0x7d   :  { %716 = vmatpush3.bf16.msra.mxu0 %v715_v22  ;;  %v766_v4 = vpack.c.bf16 %v392_v3, %v391_v2  ;;  %v396_v8 = vld [vmem:[#allocation11 + $0x28] sm:$0xff]  ;;  %v397_v10 = vld [vmem:[#allocation11 + $0x30] sm:$0xff]  ;;  %v398_v11 = vld [vmem:[#allocation11 + $0x38] sm:$0xff] }
  0x7e   :  { %717 = vmatprep.subr.bf16.mxu0 %v998_v0  ;;  %740 = vmatpush3.bf16.msra.mxu1 %v739_v27  ;;  %v772_v9 = vpack.c.bf16 %v396_v8, %v395_v7  ;;  %v775_v12 = vpack.c.bf16 %v398_v11, %v397_v10  ;;  %v399_v13 = vld [vmem:[#allocation11 + $0x40] sm:$0xff]  ;;  %v400_v14 = vld [vmem:[#allocation11 + $0x48] sm:$0xff]  ;;  %v401_v16 = vld [vmem:[#allocation11 + $0x50] sm:$0xff] }
  0x7f   :  { %741 = vmatprep.subr.bf16.mxu1 %v998_v0  ;;  %v778_v15 = vpack.c.bf16 %v400_v14, %v399_v13  ;;  %v402_v17 = vld [vmem:[#allocation11 + $0x58] sm:$0xff]  ;;  %v403_v19 = vld [vmem:[#allocation11 + $0x60] sm:$0xff]  ;;  %v404_v20 = vld [vmem:[#allocation11 + $0x68] sm:$0xff] }
  0x80   :  { %v781_v18 = vpack.c.bf16 %v402_v17, %v401_v16  ;;  %v784_v21 = vpack.c.bf16 %v404_v20, %v403_v19  ;;  %v517_v24 = vld [vmem:[%s1215_s4] ss:$0 sm:$0xff]  ;;  %v405_v31 = vld [vmem:[#allocation11 + $0x70] sm:$0xff]  ;;  %s1001_s4 = smov [#allocation13]  }
  0x81   :  { %719 = vmatpush3.bf16.msra.mxu0 %v718_v28  ;;  %633 = vmatmul.mubr.msk.f32.vlgmr.msra.gmra.mrb[0].mxu1 %vm217_vm1, %v208_v33  ;;  %v406_v32 = vld [vmem:[#allocation11 + $0x78] sm:$0xff]  ;;  %s491_s23 = sshll.u32 %s1001_s4, 4  ;;  %s492_s23 = int_to_ptr.vmem [resolvable:$true] %s491_s23 }
  0x82   :  { %720 = vmatprep.subr.bf16.mxu0 %v998_v0  ;;  %743 = vmatpush3.bf16.msra.mxu1 %v742_v34  ;;  %v787_v33 = vpack.c.bf16 %v406_v32, %v405_v31  ;;  %s934_s24 = scalar_lea.vmem %s492_s23, 128  ;;  %p939_p7 = scmp.lt.s32.totalorder %s492_s23, %s492_s23 }
  0x83   :  { %667 = vmatprep.mubr.msk.f32.mxu1 %vm999_vm0, %v1000_v1  ;;  %744 = vmatprep.subr.bf16.mxu1 %v998_v0  ;;  %p935_p6 = scmp.ne.s32.totalorder %s492_s23, %s934_s24  ;;  %p940_p8 = scmp.lt.s32.totalorder %s934_s24, %s934_s24 }
  0x85   :  { %722 = vmatpush3.bf16.msra.mxu0 %v721_v35  ;;  %p941_p9 = por %p940_p8, %p939_p7 }
  0x86   :  { %723 = vmatprep.subr.bf16.mxu0 %v998_v0  ;;  %746 = vmatpush3.bf16.msra.mxu1 %v745_v40 }
  0x87   :  { %747 = vmatprep.subr.bf16.mxu1 %v998_v0  ;;  %p942_p10 = pnand %p941_p9, %p935_p6 }
  0x89   :  { %725 = vmatpush3.bf16.msra.mxu0 %v724_v41 }
  0x8a   :  { %726 = vmatprep.subr.bf16.mxu0 %v998_v0  ;;  %749 = vmatpush3.bf16.msra.mxu1 %v748_v46 }
  0x8b   :  { %750 = vmatprep.subr.bf16.mxu1 %v998_v0 }
  0x8d   :  { %728 = vmatpush3.bf16.msra.mxu0 %v727_v47 }
  0x8e   :  { %765 = vmatprep.subr.bf16.mxu0 %v998_v0  ;;  %752 = vmatpush3.bf16.msra.mxu1 %v751_v50 }
  0x8f   :  { %753 = vmatprep.subr.bf16.mxu1 %v998_v0 }
  0x90   :  { %614 = vmatmul.mubr.f32.vlgmr.msra.gmra.mrb[0].mxu0 %v115_v51 }
  0x91   :  { %702 = vmatprep.mubr.msk.f32.mxu0 %vm999_vm0, %v1000_v1  ;;  %v393_v1 = vld [vmem:[#allocation11 + $0x10] sm:$0xff]  ;;  %767 = vmatpush3.bf16.msra.mxu0 %v766_v4 }
  0x92   :  { %755 = vmatpush3.bf16.msra.mxu1 %v754_v54  ;;  %v769_v6 = vpack.c.bf16 %v394_v5, %v393_v1  ;;  %768 = vmatprep.subr.bf16.mxu0 %v998_v0 }
  0x93   :  { %756 = vmatprep.subr.bf16.mxu1 %v998_v0 }
  0x95   :  { %770 = vmatpush3.bf16.msra.mxu0 %v769_v6 }
  0x96   :  { %758 = vmatpush3.bf16.msra.mxu1 %v757_v57  ;;  %771 = vmatprep.subr.bf16.mxu0 %v998_v0 }
  0x97   :  { %759 = vmatprep.subr.bf16.mxu1 %v998_v0 }
  0x99   :  { %773 = vmatpush3.bf16.msra.mxu0 %v772_v9 }
  0x9a   :  { %761 = vmatpush3.bf16.msra.mxu1 %v760_v60  ;;  %774 = vmatprep.subr.bf16.mxu0 %v998_v0 }
  0x9b   :  { %762 = vmatprep.subr.bf16.mxu1 %v998_v0 }
  0x9d   :  { %776 = vmatpush3.bf16.msra.mxu0 %v775_v12 }
  0x9e   :  { %764 = vmatpush3.bf16.msra.mxu1 %v763_v63  ;;  %777 = vmatprep.subr.bf16.mxu0 %v998_v0 }
  0xa1   :  { %779 = vmatpush3.bf16.msra.mxu0 %v778_v15 }
  0xa2   :  { %780 = vmatprep.subr.bf16.mxu0 %v998_v0 }
  0xa5   :  { %782 = vmatpush3.bf16.msra.mxu0 %v781_v18 }
  0xa6   :  { %783 = vmatprep.subr.bf16.mxu0 %v998_v0 }
  0xa9   :  { %785 = vmatpush3.bf16.msra.mxu0 %v784_v21 }
  0xaa   :  { %786 = vmatprep.subr.bf16.mxu0 %v998_v0  ;;  %v519_v0 = vld [vmem:[%s1217_s6] ss:$0 sm:$0xff] }
  0xad   :  { %788 = vmatpush3.bf16.msra.mxu0 %v787_v33 }
 0x154   :  { %v287_v22 = vpop.f32.mrb[0].mxu1 }
 0x155   :  { %v634_v23 = vpop.f32.mrb[1].mxu1  ;;  %v288_v25 = vadd.f32 %v517_v24, %v287_v22 }
 0x157   :  { %v292_v26 = vrot.slane %v288_v25, 4 }
 0x163   :  { %v204_v27 = vpop.f32.mrb[0].mxu0 }
 0x164   :  { %v205_v28 = vadd.f32 %v517_v24, %v204_v27  ;;  %v615_v29 = vpop.f32.mrb[1].mxu0 }
 0x166   :  { %v295_v30 = vsel %vm294_vm2, %v205_v28, %v292_v26 }
 0x167   :  { %668 = vmatmul.mubr.f32.vlgmr.msra.gmra.mrb[2].mxu1 %v295_v30  ;;  %296 = vst [vmem:[#allocation13] sm:$0xff] %v295_v30 }
 0x23a   :  { %v386_v34 = vpop.f32.mrb[2].mxu1 }
 0x23b   :  { %v387_v35 = vadd.f32 %v519_v0, %v386_v34  ;;  %v669_v36 = vpop.f32.mrb[3].mxu1 }
 0x23d   :  { %v390_v37 = vmax.f32 %v387_v35, 0.0 }
 0x23f   :  { %703 = vmatmul.mubr.f32.vlgmr.msra.gmra.mrb[2].mxu0 %v390_v37 }
 0x240   :  { %945 = shalt.err (!%p942_p10)
}
 0x241   :  { %s946_s29 = scalar_lea.hbm %s1220_s9, 128 }
 0x242   :  { %p947_p11 = scmp.ne.s32.totalorder %s1220_s9, %s946_s29  ;;  %p950_p12 = scmp.lt.u32.totalorder %s946_s29, %s1220_s9 }
 0x244   :  { %p952_p13 = pnand %p950_p12, %p947_p11 }
 0x246   :  { %955 = shalt.err (!%p952_p13)
}
 0x247   :  { %494 = dma.vmem_to_hbm [thread:$0]  %s492_s23, 128, %s1220_s9, [#allocation4]   ;;  %v520_v38 = vld [vmem:[%s1219_s8] ss:$0 sm:$0xff] }
 0x248   :  { %s1002_s16 = smov [#allocation14]  }
 0x249   :  { %s501_s1 = sshll.u32 %s1002_s16, 4  ;;  %s502_s1 = int_to_ptr.vmem [resolvable:$true] %s501_s1 }
 0x24a   :  { %s956_s18 = scalar_lea.vmem %s502_s1, 128  ;;  %p961_p1 = scmp.lt.s32.totalorder %s502_s1, %s502_s1 }
 0x24b   :  { %p957_p0 = scmp.ne.s32.totalorder %s502_s1, %s956_s18  ;;  %p962_p2 = scmp.lt.s32.totalorder %s956_s18, %s956_s18 }
 0x24d   :  { %p963_p3 = por %p962_p2, %p961_p1 }
 0x24f   :  { %p964_p4 = pnand %p963_p3, %p957_p0 }
 0x312   :  { %v480_v39 = vpop.f32.mrb[2].mxu0 }
 0x313   :  { %v481_v40 = vadd.f32 %v520_v38, %v480_v39  ;;  %v704_v41 = vpop.f32.mrb[3].mxu0 }
 0x315   :  { %484 = vst [vmem:[#allocation14] sm:$0xff] %v481_v40 }
 0x316   :  { %967 = shalt.err (!%p964_p4)
}
 0x317   :  { %s968_s20 = scalar_lea.hbm %s1221_s10, 128 }
 0x318   :  { %p969_p5 = scmp.ne.s32.totalorder %s1221_s10, %s968_s20  ;;  %p972_p6 = scmp.lt.u32.totalorder %s968_s20, %s1221_s10 }
 0x31a   :  { %p974_p7 = pnand %p972_p6, %p969_p5 }
 0x31c   :  { %977 = shalt.err (!%p974_p7)
}
 0x31d   :  { %504 = dma.vmem_to_hbm [thread:$0]  %s502_s1, 128, %s1221_s10, [#allocation15]  }
 0x31e   :  { %986 = dma.done.wait [#allocation4], 128  }
 0x31f   :  { %987 = vsyncadd [#allocation4], 4294967168 }
 0x320   :  { %988 = dma.done.wait [#allocation15], 128  }
 0x321   :  { %989 = vsyncadd [#allocation15], 4294967168 }
 0x322   :  { %511 = vsyncpa [#allocation3], 1 }
 0x323   :  { %512 = vsyncpa [#allocation6], 1 }
 0x324   :  { %513 = vsyncpa [#allocation9], 1 }
 0x325   :  { %514 = vsyncpa [#allocation12], 1 }
 0x326   :  { %515 = vsyncpa [#allocation4], 1 }
 0x327   :  { %516 = vsyncpa [#allocation15], 1 }

</bundles_post_ra>
